<compile_context>
chip_gen: v5e
topology: v5e:2x2
jax: 0.10.0
libtpu: 0.0.40
codegen_flags: <defaults>
</compile_context>

<pallas_src>
import jax
import jax.numpy as jnp
import numpy as np
from jax.experimental import pallas as pl
from jax.experimental.pallas import tpu as pltpu

LANE = 128
COMPUTE_DTYPE = jnp.bfloat16   # MXU operand dtype; accumulation stays f32


def _round_up(x, m):
    return ((x + m - 1) // m) * m


def _pick_row_tile(n_pad):
    # biggest 128-multiple tile (<=512) that divides the padded node count
    for t in (512, 256, 128):
        if n_pad % t == 0:
            return t
    return n_pad


# ----------------------------------------------------------------------------
# Fused Pallas kernel.
# Grid point (l, r):  out[rows_r, cols_l] = relu(A_hat[rows_r, :] @ (X @ W_l) + b_l)
# X (running activation) and XW (per-layer projection) persist in VMEM scratch,
# so the grid must run sequentially (layer axis carries the dependency).
# ----------------------------------------------------------------------------
def _pp_fused_kernel(a_ref, x0_ref, w_ref, b_ref, o_ref, x_scratch, xw_scratch):
    l = pl.program_id(0)           # layer index (sequential dependency)
    r = pl.program_id(1)           # row-tile index of A_hat
    tm = a_ref.shape[0]

    # One-time: load the frozen embedding into the running-activation scratch.
    @pl.when((l == 0) & (r == 0))
    def _init_x():
        x_scratch[...] = x0_ref[...]

    # Once per layer: XW = X @ W_l  (kept resident for every row tile).
    @pl.when(r == 0)
    def _project():
        xw = jnp.dot(
            x_scratch[...].astype(COMPUTE_DTYPE),
            w_ref[0].astype(COMPUTE_DTYPE),
            preferred_element_type=jnp.float32,
        )
        xw_scratch[...] = xw.astype(xw_scratch.dtype)

    # Aggregation for this row tile (MXU, f32 accumulate) + f32 bias/ReLU epilogue.
    agg = jnp.dot(a_ref[...], xw_scratch[...], preferred_element_type=jnp.float32)
    out = jnp.maximum(agg + b_ref[0], 0.0)

    o_ref[...] = out.astype(o_ref.dtype)            # lane-dense 128-wide store
    row0 = pl.multiple_of(r * tm, tm)
    x_scratch[pl.ds(row0, tm), :] = out             # becomes next layer's X


def pp_fused_forward(a_hat, x0, w_list, b_list):
    """Run the fused GCN stack once; return the per-layer activations (unpadded)."""
    n = x0.shape[0]
    num_layers = len(w_list)
    assert num_layers >= 1
    feat_dims = [x0.shape[1]] + [w.shape[1] for w in w_list]
    fp = _round_up(max(feat_dims), LANE)            # padded feature width
    n_pad = _round_up(n, LANE)                      # padded node count
    tm = _pick_row_tile(n_pad)
    num_row_tiles = n_pad // tm

    # --- zero-pad everything to lane-dense shapes ---------------------------
    a_p = jnp.zeros((n_pad, n_pad), jnp.float32).at[:n, :n].set(a_hat)
    a_p = a_p.astype(COMPUTE_DTYPE)
    x0_p = jnp.zeros((n_pad, fp), jnp.float32).at[:n, : x0.shape[1]].set(x0)
    w_stack = jnp.stack(
        [jnp.zeros((fp, fp), jnp.float32).at[: w.shape[0], : w.shape[1]].set(w)
         for w in w_list]
    ).astype(COMPUTE_DTYPE)                                      # (L, fp, fp)
    b_stack = jnp.stack(
        [jnp.zeros((1, fp), jnp.float32).at[0, : b.shape[0]].set(b)
         for b in b_list]
    )                                                            # (L, 1, fp)

    # --- VMEM budget / cost hints -------------------------------------------
    cbytes = jnp.dtype(COMPUTE_DTYPE).itemsize
    vmem_need = (
        2 * tm * n_pad * cbytes          # A row tile (double-buffered)
        + n_pad * fp * 4                 # embedding (resident)
        + 2 * fp * fp * cbytes           # W_l (double-buffered)
        + 2 * 8 * fp * 4                 # b_l
        + 2 * tm * fp * 4                # output tile (double-buffered)
        + n_pad * fp * 4                 # x_scratch (running activation)
        + n_pad * fp * cbytes            # xw_scratch
    )
    vmem_limit = int(min(max(int(vmem_need * 1.5) + (2 << 20), 16 << 20), 64 << 20))
    flops = int(2 * num_layers * (n_pad * fp * fp + n_pad * n_pad * fp))
    bytes_accessed = int(
        a_p.size * cbytes + x0_p.size * 4 + w_stack.size * cbytes
        + b_stack.size * 4 + n_pad * num_layers * fp * 4
    )

    out_slab = pl.pallas_call(
        _pp_fused_kernel,
        out_shape=jax.ShapeDtypeStruct((n_pad, num_layers * fp), jnp.float32),
        grid_spec=pltpu.PrefetchScalarGridSpec(
            num_scalar_prefetch=0,
            grid=(num_layers, num_row_tiles),
            in_specs=[
                pl.BlockSpec((tm, n_pad), lambda l, r: (r, 0)),     # A_hat rows
                pl.BlockSpec((n_pad, fp), lambda l, r: (0, 0)),     # embedding
                pl.BlockSpec((1, fp, fp), lambda l, r: (l, 0, 0)),  # W_l
                pl.BlockSpec((1, 1, fp), lambda l, r: (l, 0, 0)),   # b_l
            ],
            out_specs=pl.BlockSpec((tm, fp), lambda l, r: (r, l)),
            scratch_shapes=[
                pltpu.VMEM((n_pad, fp), jnp.float32),      # running activation X
                pltpu.VMEM((n_pad, fp), COMPUTE_DTYPE),    # XW of current layer
            ],
        ),
        compiler_params=pltpu.CompilerParams(
            # Both grid axes carry state through VMEM scratch (X / XW), so they
            # must run sequentially on a single core.
            dimension_semantics=("arbitrary", "arbitrary"),
            vmem_limit_bytes=vmem_limit,
        ),
        cost_estimate=pl.CostEstimate(
            flops=flops, transcendentals=0, bytes_accessed=bytes_accessed
        ),
    )(a_p, x0_p, w_stack, b_stack)

    return [
        out_slab[:n, i * fp: i * fp + w.shape[1]]
        for i, w in enumerate(w_list)
    ]


# ----------------------------------------------------------------------------
# Glue: replicate myGCN.norm (add_remaining_self_loops + symmetric norm)
# as a dense (N, N) normalized adjacency with A[dst, src] layout.
# ----------------------------------------------------------------------------
def build_norm_adj(edge_index, num_nodes, edge_weight=None):
    row, col = edge_index[0], edge_index[1]          # row = source (j), col = target (i)
    num_edges = row.shape[0]
    if edge_weight is None:
        edge_weight = jnp.ones((num_edges,), jnp.float32)
    edge_weight = edge_weight.astype(jnp.float32)

    is_loop = row == col
    # non-self-loop edges accumulate into A[dst, src]
    w_nl = jnp.where(is_loop, 0.0, edge_weight)
    a = jnp.zeros((num_nodes, num_nodes), jnp.float32).at[col, row].add(w_nl)

    # self-loop weights: fill_value=1 (improved=False); existing self-loop
    # weights override the fill value (out-of-range indices are dropped).
    loop_w = jnp.ones((num_nodes,), jnp.float32)
    self_idx = jnp.where(is_loop, row, num_nodes)    # num_nodes -> dropped
    loop_w = loop_w.at[self_idx].set(edge_weight)
    a = a + jnp.diag(loop_w)

    # deg[i] = sum of incoming edge weights at target i
    deg = a.sum(axis=1)
    deg_inv_sqrt = jnp.where(deg > 0.0, deg ** -0.5, 0.0)
    # A_hat[dst, src] = d^-1/2[dst] * w * d^-1/2[src]
    return deg_inv_sqrt[:, None] * a * deg_inv_sqrt[None, :]


# ----------------------------------------------------------------------------
# PP module: deterministic parameter init + forward
# ----------------------------------------------------------------------------
def init_pp_params(key, in_dim, nhid_list):
    k_emb, *k_layers = jax.random.split(key, len(nhid_list))
    params = {
        # self.embedding.data.normal_()
        "embedding": jax.random.normal(k_emb, (in_dim, nhid_list[0]), jnp.float32),
        "layers": [],
    }
    for i in range(len(nhid_list) - 1):
        f_in, f_out = nhid_list[i], nhid_list[i + 1]
        stdv = float(np.sqrt(6.0 / (f_in + f_out)))
        w = jax.random.uniform(k_layers[i], (f_in, f_out), jnp.float32,
                               minval=-stdv, maxval=stdv)
        b = jnp.zeros((f_out,), jnp.float32)          # bias filled with 0
        params["layers"].append((w, b))
    return params


def pp_forward(params, x_unused, pp_edge_index, edge_weight):
    # PP.forward ignores its `x` argument and uses the frozen embedding.
    del x_unused
    x0 = params["embedding"]
    num_nodes = x0.shape[0]
    a_hat = build_norm_adj(pp_edge_index, num_nodes, edge_weight)

    w_list = [w for (w, _) in params["layers"]]
    b_list = [b for (_, b) in params["layers"]]
    # every layer applies GCN + ReLU (including the last), fused in one kernel
    layer_outs = pp_fused_forward(a_hat, x0, w_list, b_list)
    return jnp.concatenate([x0] + layer_outs, axis=1)


# ----------------------------------------------------------------------------
if __name__ == "__main__":
    key = jax.random.PRNGKey(0)

    in_dim = 16                 # == number of nodes (embedding rows)
    nhid_list = [32, 16, 8]     # 2 GCN layers: 32->16, 16->8
    num_edges = 48

    k_params, k_src, k_dst, k_w = jax.random.split(key, 4)
    params = init_pp_params(k_params, in_dim, nhid_list)

    src = jax.random.randint(k_src, (num_edges,), 0, in_dim, dtype=jnp.int32)
    dst = jax.random.randint(k_dst, (num_edges,), 0, in_dim, dtype=jnp.int32)
    pp_edge_index = jnp.stack([src, dst], axis=0)                 # (2, E)
    edge_weight = jax.random.uniform(k_w, (num_edges,), jnp.float32,
                                     minval=0.5, maxval=1.5)      # (E,)

    x_dummy = jnp.zeros((in_dim, nhid_list[0]), jnp.float32)      # ignored by PP

    out = pp_forward(params, x_dummy, pp_edge_index, edge_weight)
    out = jax.block_until_ready(out)

    expected_cols = sum(nhid_list)                                # 32 + 16 + 8
    assert out.shape == (in_dim, expected_cols), out.shape
    assert out.dtype == jnp.float32
    assert bool(jnp.all(jnp.isfinite(out)))

    print("KERNEL_OK")
</pallas_src>

<mosaic_0001>
module attributes {stable_mosaic.version = 11 : i64} {
  func.func @_pp_fused_kernel(%arg0: i32, %arg1: i32, %arg2: memref<128x128xbf16, #tpu.memory_space<vmem>>, %arg3: memref<128x128xf32, #tpu.memory_space<vmem>>, %arg4: memref<1x128x128xbf16, #tpu.memory_space<vmem>>, %arg5: memref<1x1x128xf32, #tpu.memory_space<vmem>>, %arg6: memref<128x128xf32, #tpu.memory_space<vmem>>, %arg7: memref<128x128xf32, #tpu.memory_space<vmem>>, %arg8: memref<128x128xbf16, #tpu.memory_space<vmem>>) attributes {dimension_semantics = [#tpu.dimension_semantics<arbitrary>, #tpu.dimension_semantics<arbitrary>], iteration_bounds = array<i64: 2, 1>, scalar_prefetch = 0 : i64, scratch_operands = 2 : i64, tpu.core_type = #tpu.core_type<tc>, window_params = [{transform_indices = @transform_0, window_bounds = array<i64: 128, 128>}, {pipeline_mode = #tpu.pipeline_mode<synchronous>, transform_indices = @transform_1, window_bounds = array<i64: 128, 128>}, {transform_indices = @transform_2, window_bounds = array<i64: 1, 128, 128>}, {transform_indices = @transform_3, window_bounds = array<i64: 1, 1, 128>}, {transform_indices = @transform_4, window_bounds = array<i64: 128, 128>}]} {
    %c0_i32 = arith.constant 0 : i32
    %0 = arith.cmpi eq, %arg0, %c0_i32 : i32
    %c0_i32_0 = arith.constant 0 : i32
    %1 = arith.cmpi eq, %arg1, %c0_i32_0 : i32
    %2 = arith.andi %0, %1 : i1
    %3 = arith.extui %2 : i1 to i32
    %c0_i32_1 = arith.constant 0 : i32
    %4 = arith.cmpi ne, %3, %c0_i32_1 : i32
    scf.if %4 {
      %c0_14 = arith.constant 0 : index
      %c0_15 = arith.constant 0 : index
      %22 = vector.load %arg3[%c0_14, %c0_15] : memref<128x128xf32, #tpu.memory_space<vmem>>, vector<128x128xf32>
      %c0_16 = arith.constant 0 : index
      %c0_17 = arith.constant 0 : index
      %23 = vector.load %arg7[%c0_16, %c0_17] : memref<128x128xf32, #tpu.memory_space<vmem>>, vector<128x128xf32>
      tpu.vector_store %arg7[%c0_16, %c0_17], %22 {strides = array<i32>} : memref<128x128xf32, #tpu.memory_space<vmem>>, vector<128x128xf32>,
    } else {
    }
    %c0_i32_2 = arith.constant 0 : i32
    %5 = arith.cmpi eq, %arg1, %c0_i32_2 : i32
    %6 = arith.extui %5 : i1 to i32
    %c0_i32_3 = arith.constant 0 : i32
    %7 = arith.cmpi ne, %6, %c0_i32_3 : i32
    scf.if %7 {
      %c0_14 = arith.constant 0 : index
      %c0_15 = arith.constant 0 : index
      %22 = vector.load %arg7[%c0_14, %c0_15] : memref<128x128xf32, #tpu.memory_space<vmem>>, vector<128x128xf32>
      %23 = arith.truncf %22 : vector<128x128xf32> to vector<128x128xbf16>
      %c0_16 = arith.constant 0 : index
      %c0_17 = arith.constant 0 : index
      %c0_18 = arith.constant 0 : index
      %24 = vector.load %arg4[%c0_16, %c0_17, %c0_18] : memref<1x128x128xbf16, #tpu.memory_space<vmem>>, vector<1x128x128xbf16>
      %25 = vector.shape_cast %24 : vector<1x128x128xbf16> to vector<128x128xbf16>
      %cst_19 = arith.constant dense<0.000000e+00> : vector<128x128xf32>
      %26 = tpu.matmul %23, %25, %cst_19 {dimension_numbers = #tpu.dot_dimension_numbers<[1], [0], [0], [1], [0, 0, 1, 1], [], []>} : vector<128x128xbf16>, vector<128x128xbf16>, vector<128x128xf32> -> vector<128x128xf32>
      %27 = arith.truncf %26 : vector<128x128xf32> to vector<128x128xbf16>
      %c0_20 = arith.constant 0 : index
      %c0_21 = arith.constant 0 : index
      %28 = vector.load %arg8[%c0_20, %c0_21] : memref<128x128xbf16, #tpu.memory_space<vmem>>, vector<128x128xbf16>
      tpu.vector_store %arg8[%c0_20, %c0_21], %27 {strides = array<i32>} : memref<128x128xbf16, #tpu.memory_space<vmem>>, vector<128x128xbf16>,
    } else {
    }
    %c0 = arith.constant 0 : index
    %c0_4 = arith.constant 0 : index
    %8 = vector.load %arg2[%c0, %c0_4] : memref<128x128xbf16, #tpu.memory_space<vmem>>, vector<128x128xbf16>
    %c0_5 = arith.constant 0 : index
    %c0_6 = arith.constant 0 : index
    %9 = vector.load %arg8[%c0_5, %c0_6] : memref<128x128xbf16, #tpu.memory_space<vmem>>, vector<128x128xbf16>
    %cst = arith.constant dense<0.000000e+00> : vector<128x128xf32>
    %10 = tpu.matmul %8, %9, %cst {dimension_numbers = #tpu.dot_dimension_numbers<[1], [0], [0], [1], [0, 0, 1, 1], [], []>} : vector<128x128xbf16>, vector<128x128xbf16>, vector<128x128xf32> -> vector<128x128xf32>
    %c0_7 = arith.constant 0 : index
    %c0_8 = arith.constant 0 : index
    %c0_9 = arith.constant 0 : index
    %11 = vector.load %arg5[%c0_7, %c0_8, %c0_9] : memref<1x1x128xf32, #tpu.memory_space<vmem>>, vector<1x1x128xf32>
    %12 = vector.shape_cast %11 : vector<1x1x128xf32> to vector<1x128xf32>
    %13 = vector.broadcast %12 : vector<1x128xf32> to vector<128x128xf32>
    %14 = arith.addf %10, %13 : vector<128x128xf32>
    %cst_10 = arith.constant 0.000000e+00 : f32
    %15 = vector.broadcast %cst_10 : f32 to vector<128x128xf32>
    %16 = arith.maximumf %14, %15 : vector<128x128xf32>
    %c0_11 = arith.constant 0 : index
    %c0_12 = arith.constant 0 : index
    %17 = vector.load %arg6[%c0_11, %c0_12] : memref<128x128xf32, #tpu.memory_space<vmem>>, vector<128x128xf32>
    tpu.vector_store %arg6[%c0_11, %c0_12], %16 {strides = array<i32>} : memref<128x128xf32, #tpu.memory_space<vmem>>, vector<128x128xf32>,
    %c128_i32 = arith.constant 128 : i32
    %18 = arith.muli %arg1, %c128_i32 : i32
    %19 = tpu.assume_multiple %18, 128 : i32
    %20 = arith.index_cast %19 : i32 to index
    %c0_13 = arith.constant 0 : index
    %21 = vector.load %arg7[%20, %c0_13] : memref<128x128xf32, #tpu.memory_space<vmem>>, vector<128x128xf32>
    tpu.vector_store %arg7[%20, %c0_13], %16 {strides = array<i32>} : memref<128x128xf32, #tpu.memory_space<vmem>>, vector<128x128xf32>,
    return
  }
  func.func @transform_0(%arg0: i32, %arg1: i32) -> (i32, i32) {
    %c0_i32 = arith.constant 0 : i32
    %c0_i32_0 = arith.constant 0 : i32
    return %arg1, %c0_i32 : i32, i32
  }
  func.func @transform_1(%arg0: i32, %arg1: i32) -> (i32, i32) {
    %c0_i32 = arith.constant 0 : i32
    %c0_i32_0 = arith.constant 0 : i32
    %c0_i32_1 = arith.constant 0 : i32
    return %c0_i32, %c0_i32_0 : i32, i32
  }
  func.func @transform_2(%arg0: i32, %arg1: i32) -> (i32, i32, i32) {
    %c0_i32 = arith.constant 0 : i32
    %c0_i32_0 = arith.constant 0 : i32
    %c0_i32_1 = arith.constant 0 : i32
    return %arg0, %c0_i32, %c0_i32_0 : i32, i32, i32
  }
  func.func @transform_3(%arg0: i32, %arg1: i32) -> (i32, i32, i32) {
    %c0_i32 = arith.constant 0 : i32
    %c0_i32_0 = arith.constant 0 : i32
    %c0_i32_1 = arith.constant 0 : i32
    return %arg0, %c0_i32, %c0_i32_0 : i32, i32, i32
  }
  func.func @transform_4(%arg0: i32, %arg1: i32) -> (i32, i32) {
    %c0_i32 = arith.constant 0 : i32
    return %arg1, %arg0 : i32, i32
  }
}

</mosaic_0001>

<bundles_post_ra>
// kernel: tpu_custom_call.1
= control target key start
LH: loop header
LB: loop body
LE: loop exit
PB: predicated region body
PF: predicated region fallthrough
CT: control target
= control target key end

     0   :  { %s1595_s0 = inlined_call_operand.hbm [shape: bf16[128,128], index: 0, kind: input, shape index: {}]   ;;  %s1596_s1 = inlined_call_operand.hbm [shape: f32[128,128], index: 1, kind: input, shape index: {}]   ;;  %s1597_s2 = inlined_call_operand.hbm [shape: bf16[2,128,128], index: 2, kind: input, shape index: {}]   ;;  %s1598_s3 = inlined_call_operand.vmem [shape: f32[2,1,128], index: 3, kind: input, shape index: {}]   ;;  %s1599_s4 = inlined_call_operand.hbm [shape: f32[128,256], index: 4, kind: output, shape index: {}]  }
   0x1   :  { %1602 = sst [smem:[#allocation15_spill]] %s1595_s0 }
   0x2   :  { %1603 = sst [smem:[#allocation16_spill]] %s1596_s1 }
   0x3   :  { %9 = vsyncpa [#allocation5], 0 }
   0x4   :  { %10 = vsyncpa [#allocation8], 0 }
   0x5   :  { %11 = vsyncpa [#allocation6], 0 }
   0x6   :  { %13 = vsyncpa [#allocation6 + $0x1], 0  ;;  %s1372_s15 = smov 0   ;;  %s1374_s16 = smov 0  }
   0x7   :  { %s1376_s17 = smov 0   ;;  %s1378_s18 = smov 0  }
   0x8   :  { %s1380_s19 = smov 0   ;;  %s1382_s20 = smov 0  }
   0x9 LB: > { %s1403_s21 = sadd.s32 4294967295, %s1336_s20   ;;  %s862_s22 = sadd.s32 4294967294, %s1336_s20   ;;  %s1336_s20 = sphi %s1382_s20, %s19_s20   ;;  %s1332_s19 = sphi %s1380_s19, %s1617_s19   ;;  %s1328_s18 = sphi %s1378_s18, %s1616_s18   ;;  %s1324_s17 = sphi %s1376_s17, %s1615_s17   ;;  %s1320_s16 = sphi %s1374_s16, %s1614_s16   ;;  %s1316_s15 = sphi %s1372_s15, %s1613_s15  }
   0xa   : > { %p98_p0 = scmp.ne.s32.totalorder %s1320_s16, %s1316_s15  ;;  %p99_p1 = scmp.eq.s32.totalorder %s1403_s21, 0 }
   0xb   : > { %p150_p2 = scmp.eq.s32.totalorder %s1403_s21, 1  ;;  %p156_p3 = scmp.eq.s32.totalorder %s862_s22, 1 }
   0xc   : > { %p1412_p4 = por %p99_p1, %p98_p0  ;;  %p863_p5 = scmp.ge.s32.totalorder %s1336_s20, 1 }
   0xd   : > { %p1417_p6 = por %p156_p3, %p98_p0  ;;  %p163_p7 = scmp.lt.s32.totalorder %s1336_s20, 3 }
   0xe   : > { %s1606_s0 = sld [smem:[#allocation15_spill]]  ;;  %s1338_s29 = smov [#allocation4]  }
   0xf   : > { %p1425_p8 = pnand %p863_p5, %p163_p7  ;;  %s179_s30 = sshll.u32 %s1338_s29, 4  ;;  %s180_s30 = int_to_ptr.vmem [resolvable:$true] %s179_s30 }
  0x10   : > { %p866_p11 = scmp.ge.s32.totalorder %s1336_s20, 2  ;;  %s1608_s1 = sld [smem:[#allocation16_spill]] }
  0x11   : > { %p1077_p9 = pneg %p1425_p8  ;;  %s1600_s8 = smov 64  }
  0x12   : > { %s1601_s9 = smov 4   ;;  %s1341_s10 = smov [#allocation7]  }
  0x13   : > { %p1078_p10 = pnand %p1077_p9, %p99_p1  ;;  %s193_s11 = sshll.u32 %s1341_s10, 4  ;;  %s194_s11 = int_to_ptr.vmem [resolvable:$true] %s193_s11 }
  0x14   : > { %s177_s27 = sshll.u32 %s1606_s0, 4  ;;  %s1342_s12 = smov 128   ;;  %s178_s27 = int_to_ptr.hbm [resolvable:$true] %s177_s27 }
  0x15   : > { %1080 = dma.hbm_to_vmem [thread:$0]  (!%p1078_p10), %s178_s27, 1024, %s180_s30, [#allocation5], %s1600_s8, %s1600_s8, %s1601_s9  }
  0x16   : > { %s191_s7 = sshll.u32 %s1608_s1, 4  ;;  %s1343_s13 = smov 8   ;;  %s192_s7 = int_to_ptr.hbm [resolvable:$true] %s191_s7 }
  0x17   : > { %1083 = dma.hbm_to_vmem [thread:$0]  (!%p1078_p10), %s192_s7, 2048, %s194_s11, [#allocation8], %s1342_s12, %s1342_s12, %s1343_s13  }
  0x18   : > { %s31_s14 = sadd.s32 1, %s1332_s19  ;;  %s85_s22 = sadd.s32 1, %s1324_s17 }
  0x19   : > { %p33_p12 = scmp.ge.s32.totalorder %s31_s14, 2  ;;  %p92_p13 = scmp.ne.s32.totalorder %s1324_s17, %s1320_s16 }
  0x1a   : > { %p93_p0 = scmp.eq.s32.totalorder %s1336_s20, 0  ;;  %p1094_p3 = scmp.lt.s32.totalorder %s1336_s20, 2 }
  0x1b   : > { %s1619_s14 = smov (%p33_p12, %s31_s14), 0  ;;  %p1454_p7 = por %p150_p2, %p92_p13 }
  0x1c   : > { %p1448_p5 = por %p93_p0, %p92_p13  ;;  %s82_s27 = ssub.s32 %s1332_s19, %s1619_s14 }
  0x1d   : > { %s207_s29 = sand.u32 1, %s1336_s20   ;;  %p83_p9 = scmp.eq.s32.totalorder %s82_s27, 0 }
  0x1e   : > { %s209_s30 = sand.u32 1, %s1324_s17   ;;  %s976_s5 = sshll.u32 %s1332_s19, 6 }
  0x1f   : > { %s1464_s6 = scalar_select %p83_p9, %s1324_s17, %s85_s22  }
  0x20   : > { %s867_s7 = sshll.u32 %s209_s30, 6  ;;  %s216_s12 = scalar_lea.hbm %s1597_s2, %s976_s5 }
  0x21   : > { %s217_s13 = sshll.u32 %s216_s12, 4  ;;  %s211_s8 = scalar_lea.vmem [#allocation9], %s867_s7  ;;  %s218_s13 = int_to_ptr.hbm [resolvable:$true] %s217_s13 }
  0x22   : > { %s219_s9 = sshll.u32 %s211_s8, 4  ;;  %p1085_p2 = pnand %p1094_p3, %p1448_p5  ;;  %s220_s9 = int_to_ptr.vmem [resolvable:$true] %s219_s9 }
  0x23   : > { %s208_s0 = scalar_lea.sflag [#allocation5], %s207_s29  ;;  %s1611_s1 = smov 4  }
  0x24   : > { %s1612_s27 = smov 64   ;;  %237 = sbr.rel (%p1425_p8) target bundleno = 526 (0x20e), region = 36 }
  0x25   : > { %1087 = dma.hbm_to_vmem [thread:$0]  (!%p1085_p2), %s218_s13, 1024, %s220_s9, %s208_s0, %s1612_s27, %s1612_s27, %s1611_s1  }
  0x29   : > { %1299 = dma.done.wait (%p99_p1), [#allocation5], 1024  }
  0x2a   : > { %1301 = vsyncadd (%p99_p1), [#allocation5], 4294966272 }
  0x2b   : > { %1303 = dma.done.wait (%p99_p1), [#allocation8], 2048  }
  0x2c   : > { %1305 = vsyncadd (%p99_p1), [#allocation8], 4294965248  ;;  %s249_s8 = sand.u32 1, %s1403_s21   ;;  %s1488_s0 = sand.u32 1, %s1320_s16  }
  0x2d   : > { %s873_s1 = sshll.u32 %s1488_s0, 6  ;;  %s250_s28 = scalar_lea.sflag [#allocation5], %s249_s8 }
  0x2e   : > { %s1491_s9 = scalar_lea.vmem [#allocation9], %s873_s1 }
  0x2f   : > { %1307 = dma.done.wait (%p1412_p4), %s250_s28, 1024  }
  0x30   : > { %1309 = vsyncadd (%p1412_p4), %s250_s28, 4294966272  ;;  %s874_s22 = sshll.u32 %s1488_s0, 7  ;;  %p283_p1 = scmp.lt.s32.totalorder %s1328_s18, 1 }
  0x31   : > { %p287_p8 = scmp.eq.s32.totalorder %s1328_s18, 0  ;;  %s1507_s5 = scalar_lea.vmem [#allocation10], %s874_s22 }
  0x32   : > { %s1501_s21 = scalar_select %p283_p1, %s1328_s18, 1  ;;  %v293_v0 = vld [vmem:[#allocation7] sm:$0xff] (%p287_p8)  ;;  %v294_v1 = vld [vmem:[#allocation7 + $0x8] sm:$0xff] (%p287_p8)  ;;  %v295_v2 = vld [vmem:[#allocation7 + $0x10] sm:$0xff] (%p287_p8) }
  0x33   : > { %292 = sbr.rel (!%p287_p8) target bundleno = 67 (0x43), region = 52  ;;  %309 = vst [vmem:[#allocation2 + $0x30] sm:$0xff] (%p287_p8), %v293_v0  ;;  %v296_v3 = vld [vmem:[#allocation7 + $0x18] sm:$0xff] (%p287_p8)  ;;  %v297_v4 = vld [vmem:[#allocation7 + $0x20] sm:$0xff] (%p287_p8)  ;;  %v298_v5 = vld [vmem:[#allocation7 + $0x28] sm:$0xff] (%p287_p8) }
  0x34   : > { %s285_s30 = scalar_lea.vmem %s1598_s3, %s1501_s21  ;;  %310 = vst [vmem:[#allocation2] sm:$0xff] (%p287_p8), %v294_v1  ;;  %v299_v6 = vld [vmem:[#allocation7 + $0x30] sm:$0xff] (%p287_p8)  ;;  %v300_v7 = vld [vmem:[#allocation7 + $0x38] sm:$0xff] (%p287_p8)  ;;  %v301_v8 = vld [vmem:[#allocation7 + $0x40] sm:$0xff] (%p287_p8) }
  0x35   : > { %311 = vst [vmem:[#allocation2 + $0x58] sm:$0xff] (%p287_p8), %v295_v2  ;;  %v302_v9 = vld [vmem:[#allocation7 + $0x48] sm:$0xff] (%p287_p8)  ;;  %v303_v10 = vld [vmem:[#allocation7 + $0x50] sm:$0xff] (%p287_p8)  ;;  %v304_v11 = vld [vmem:[#allocation7 + $0x58] sm:$0xff] (%p287_p8) }
  0x36   : > { %312 = vst [vmem:[#allocation2 + $0x18] sm:$0xff] (%p287_p8), %v296_v3  ;;  %v305_v12 = vld [vmem:[#allocation7 + $0x60] sm:$0xff] (%p287_p8)  ;;  %v306_v13 = vld [vmem:[#allocation7 + $0x68] sm:$0xff] (%p287_p8)  ;;  %v307_v14 = vld [vmem:[#allocation7 + $0x70] sm:$0xff] (%p287_p8) }
  0x37   : > { %313 = vst [vmem:[#allocation2 + $0x50] sm:$0xff] (%p287_p8), %v297_v4  ;;  %v308_v15 = vld [vmem:[#allocation7 + $0x78] sm:$0xff] (%p287_p8) }
  0x38   : > { %314 = vst [vmem:[#allocation2 + $0x68] sm:$0xff] %v298_v5 }
  0x39   : > { %315 = vst [vmem:[#allocation2 + $0x8] sm:$0xff] %v299_v6 }
  0x3a   : > { %316 = vst [vmem:[#allocation2 + $0x48] sm:$0xff] %v300_v7 }
  0x3b   : > { %317 = vst [vmem:[#allocation2 + $0x40] sm:$0xff] %v301_v8 }
  0x3c   : > { %318 = vst [vmem:[#allocation2 + $0x20] sm:$0xff] %v302_v9 }
  0x3d   : > { %319 = vst [vmem:[#allocation2 + $0x10] sm:$0xff] %v303_v10 }
  0x3e   : > { %320 = vst [vmem:[#allocation2 + $0x38] sm:$0xff] %v304_v11 }
  0x3f   : > { %321 = vst [vmem:[#allocation2 + $0x60] sm:$0xff] %v305_v12 }
  0x40   : > { %322 = vst [vmem:[#allocation2 + $0x70] sm:$0xff] %v306_v13 }
  0x41   : > { %323 = vst [vmem:[#allocation2 + $0x78] sm:$0xff] %v307_v14 }
  0x42   : > { %324 = vst [vmem:[#allocation2 + $0x28] sm:$0xff] %v308_v15 }
  0x43 PF: > { %v985_v16 = vld [vmem:[%s1491_s9 + $0x38] sm:$0xff]  ;;  %v984_v17 = vld [vmem:[%s1491_s9 + $0x30] sm:$0xff]  ;;  %v983_v18 = vld [vmem:[%s1491_s9 + $0x28] sm:$0xff]  ;;  %s973_s10 = sshll.u32 %s1328_s18, 3  ;;  %s743_s27 = sshll.u32 %s1507_s5, 4  ;;  %s744_s27 = int_to_ptr.vmem [resolvable:$true] %s743_s27 }
  0x44   : > { %1049 = vmatpush.bf16.msra.mxu2 %v985_v16  ;;  %416 = vmatpush.bf16.msra.mxu0 %v985_v16  ;;  %v982_v19 = vld [vmem:[%s1491_s9 + $0x20] sm:$0xff]  ;;  %v981_v20 = vld [vmem:[%s1491_s9 + $0x18] sm:$0xff]  ;;  %v980_v21 = vld [vmem:[%s1491_s9 + $0x10] sm:$0xff]  ;;  %s742_s13 = scalar_lea.hbm %s1599_s4, %s973_s10  ;;  %s729_s18 = scalar_lea.sflag [#allocation6], %s1488_s0 }
  0x45   : > { %v979_v22 = vld [vmem:[%s1491_s9 + $0x8] sm:$0xff]  ;;  %v978_v23 = vld [vmem:[%s1491_s9] sm:$0xff]  ;;  %v328_v26 = vld [vmem:[#allocation2 + $0x30] sm:$0xff]  ;;  %s745_s8 = sshll.u32 %s742_s13, 4  ;;  %s1266_s21 = scalar_lea.hbm %s1599_s4, 256  ;;  %s746_s8 = int_to_ptr.hbm [resolvable:$true] %s745_s8 }
  0x46   : > { %v336_v24 = vld [vmem:[#allocation2 + $0x40] sm:$0xff]  ;;  %v338_v30 = vld [vmem:[#allocation2 + $0x10] sm:$0xff]  ;;  %v339_v31 = vld [vmem:[#allocation2 + $0x38] sm:$0xff]  ;;  %s1260_s1 = sshra.s32 %s746_s8, 4  ;;  %s1261_s1 = int_to_ptr.hbm [resolvable:$true] %s1260_s1 }
  0x47   : > { %v337_v25 = vld [vmem:[#allocation2 + $0x20] sm:$0xff]  ;;  %v330_v32 = vld [vmem:[#allocation2 + $0x58] sm:$0xff]  ;;  %v349_v34 = vpack.c.bf16 %v339_v31, %v338_v30  ;;  %v341_v37 = vld [vmem:[#allocation2 + $0x70] sm:$0xff]  ;;  %s1262_s28 = scalar_lea.hbm %s1261_s1, 128  ;;  %p1267_p13 = scmp.lt.s32.totalorder %s1261_s1, %s1599_s4 }
  0x48   : > { %1050 = vmatpush.bf16.msra.mxu2 %v984_v17  ;;  %417 = vmatpush.bf16.msra.mxu0 %v984_v17  ;;  %v329_v27 = vld [vmem:[#allocation2] sm:$0xff]  ;;  %v348_v28 = vpack.c.bf16 %v337_v25, %v336_v24  ;;  %v331_v33 = vld [vmem:[#allocation2 + $0x18] sm:$0xff]  ;;  %v334_v44 = vld [vmem:[#allocation2 + $0x8] sm:$0xff]  ;;  %p1263_p4 = scmp.ne.s32.totalorder %s1261_s1, %s1262_s28  ;;  %p1268_p0 = scmp.lt.s32.totalorder %s1266_s21, %s1262_s28 }
  0x49   : > { %v344_v29 = vpack.c.bf16 %v329_v27, %v328_v26  ;;  %v345_v35 = vpack.c.bf16 %v331_v33, %v330_v32  ;;  %v340_v36 = vld [vmem:[#allocation2 + $0x60] sm:$0xff]  ;;  %v332_v38 = vld [vmem:[#allocation2 + $0x50] sm:$0xff]  ;;  %v342_v42 = vld [vmem:[#allocation2 + $0x78] sm:$0xff] }
  0x4a   : > { %v333_v39 = vld [vmem:[#allocation2 + $0x68] sm:$0xff]  ;;  %v350_v40 = vpack.c.bf16 %v341_v37, %v340_v36  ;;  %v986_v16 = vld [vmem:[#allocation4] sm:$0xff]  ;;  %p1264_p10 = pnand %p1263_p4, %p1454_p7  ;;  %p1269_p3 = por %p1268_p0, %p1267_p13 }
  0x4b   : > { %v346_v41 = vpack.c.bf16 %v333_v39, %v332_v38  ;;  %v343_v43 = vld [vmem:[#allocation2 + $0x28] sm:$0xff]  ;;  %v990_v17 = vld [vmem:[#allocation4 + $0x20] sm:$0xff] }
  0x4c   : > { %1051 = vmatpush.bf16.msra.mxu2 %v983_v18  ;;  %418 = vmatpush.bf16.msra.mxu0 %v983_v18  ;;  %v335_v45 = vld [vmem:[#allocation2 + $0x48] sm:$0xff]  ;;  %v351_v46 = vpack.c.bf16 %v343_v43, %v342_v42  ;;  %v1522_v24 = vld [vmem:[%s285_s30] ss:$0 sm:$0xff]  ;;  %p1265_p12 = pneg %p1264_p10 }
  0x4d   : > { %v347_v47 = vpack.c.bf16 %v335_v45, %v334_v44  ;;  %v987_v18 = vld [vmem:[#allocation4 + $0x8] sm:$0xff] }
  0x4e   : > { %p1270_p5 = pnand %p1269_p3, %p1265_p12 }
  0x50   : > { %1052 = vmatpush.bf16.msra.mxu2 %v982_v19  ;;  %419 = vmatpush.bf16.msra.mxu0 %v982_v19  ;;  %v991_v19 = vld [vmem:[#allocation4 + $0x28] sm:$0xff] }
  0x54   : > { %1053 = vmatpush.bf16.msra.mxu2 %v981_v20  ;;  %420 = vmatpush.bf16.msra.mxu0 %v981_v20  ;;  %v988_v20 = vld [vmem:[#allocation4 + $0x10] sm:$0xff] }
  0x58   : > { %1054 = vmatpush.bf16.msra.mxu2 %v980_v21  ;;  %421 = vmatpush.bf16.msra.mxu0 %v980_v21  ;;  %v992_v21 = vld [vmem:[#allocation4 + $0x30] sm:$0xff] }
  0x5c   : > { %1055 = vmatpush.bf16.msra.mxu2 %v979_v22  ;;  %422 = vmatpush.bf16.msra.mxu0 %v979_v22  ;;  %v989_v22 = vld [vmem:[#allocation4 + $0x18] sm:$0xff] }
  0x60   : > { %1056 = vmatpush.bf16.msra.mxu2 %v978_v23  ;;  %423 = vmatpush.bf16.msra.mxu0 %v978_v23  ;;  %v993_v23 = vld [vmem:[#allocation4 + $0x38] sm:$0xff] }
  0x63   : > { %444 = vmatmul.bf16.vlgmr.msra.gmra.mxu2 %v348_v28  ;;  %424 = vmatmul.bf16.vlgmr.msra.gmra.mxu0 %v344_v29 }
  0x73   : > { %449 = vmatmul.bf16.gmra.mxu2 %v349_v34  ;;  %429 = vmatmul.bf16.gmra.mxu0 %v345_v35 }
  0x83   : > { %454 = vmatmul.bf16.gmra.mxu2 %v350_v40  ;;  %434 = vmatmul.bf16.gmra.mxu0 %v346_v41 }
  0x93   : > { %459 = vmatmul.bf16.gmra.mxu2 %v351_v46  ;;  %439 = vmatmul.bf16.gmra.mxu0 %v347_v47 }
  0xe0   : > { %v425_v48 = vpop.f32.mrf.mxu0 }
  0xe6   : > { %v445_v49 = vpop.f32.mrf.mxu2 }
  0xe8   : > { %v427_v50 = vpop.f32.mrf.mxu0 }
  0xe9   : > { %v1005_v51 = vpack.c.bf16 %v427_v50, %v425_v48 }
  0xeb   : > { %1006 = vst [vmem:[#allocation3 + $0x28] sm:$0xff] %v1005_v51  }
  0xee   : > { %v447_v52 = vpop.f32.mrf.mxu2 }
  0xef   : > { %v1025_v53 = vpack.c.bf16 %v447_v52, %v445_v49 }
  0xf0   : > { %v430_v54 = vpop.f32.mrf.mxu0 }
  0xf1   : > { %1045 = vst [vmem:[#allocation3 + $0x18] sm:$0xff] %v1025_v53  }
  0xf2   : > { %v994_v15 = vld [vmem:[#allocation3 + $0x28] sm:$0xff] }
  0xf6   : > { %v450_v55 = vpop.f32.mrf.mxu2 }
  0xf8   : > { %v432_v56 = vpop.f32.mrf.mxu0  ;;  %v998_v11 = vld [vmem:[#allocation3 + $0x18] sm:$0xff] }
  0xf9   : > { %v1010_v57 = vpack.c.bf16 %v432_v56, %v430_v54 }
  0xfb   : > { %1042 = vst [vmem:[#allocation3] sm:$0xff] %v1010_v57  }
  0xfe   : > { %v452_v58 = vpop.f32.mrf.mxu2 }
  0xff   : > { %v1030_v59 = vpack.c.bf16 %v452_v58, %v450_v55 }
 0x100   : > { %v435_v60 = vpop.f32.mrf.mxu0 }
 0x101   : > { %1046 = vst [vmem:[#allocation3 + $0x8] sm:$0xff] %v1030_v59  }
 0x102   : > { %v995_v14 = vld [vmem:[#allocation3] sm:$0xff] }
 0x106   : > { %v455_v61 = vpop.f32.mrf.mxu2 }
 0x108   : > { %v437_v62 = vpop.f32.mrf.mxu0  ;;  %v999_v10 = vld [vmem:[#allocation3 + $0x8] sm:$0xff] }
 0x109   : > { %v1015_v63 = vpack.c.bf16 %v437_v62, %v435_v60 }
 0x10b   : > { %1043 = vst [vmem:[#allocation3 + $0x10] sm:$0xff] %v1015_v63  }
 0x10e   : > { %v457_v0 = vpop.f32.mrf.mxu2 }
 0x10f   : > { %v1035_v1 = vpack.c.bf16 %v457_v0, %v455_v61 }
 0x110   : > { %v440_v2 = vpop.f32.mrf.mxu0 }
 0x111   : > { %1047 = vst [vmem:[#allocation3 + $0x38] sm:$0xff] %v1035_v1  }
 0x112   : > { %v996_v13 = vld [vmem:[#allocation3 + $0x10] sm:$0xff] }
 0x116   : > { %v460_v3 = vpop.f32.mrf.mxu2 }
 0x118   : > { %v442_v4 = vpop.f32.mrf.mxu0  ;;  %v1000_v9 = vld [vmem:[#allocation3 + $0x38] sm:$0xff] }
 0x119   : > { %v1020_v5 = vpack.c.bf16 %v442_v4, %v440_v2 }
 0x11b   : > { %1044 = vst [vmem:[#allocation3 + $0x20] sm:$0xff] %v1020_v5  }
 0x11e   : > { %v462_v6 = vpop.f32.mrf.mxu2 }
 0x11f   : > { %v1040_v7 = vpack.c.bf16 %v462_v6, %v460_v3 }
 0x121   : > { %1048 = vst [vmem:[#allocation3 + $0x30] sm:$0xff] %v1040_v7  }
 0x122   : > { %v997_v12 = vld [vmem:[#allocation3 + $0x20] sm:$0xff] }
 0x128   : > { %v1001_v8 = vld [vmem:[#allocation3 + $0x30] sm:$0xff] }
 0x129   : > { %629 = vmatpush.bf16.msra.mxu1 %v1001_v8  ;;  %1057 = vmatpush.bf16.msra.mxu3 %v1001_v8 }
 0x12d   : > { %630 = vmatpush.bf16.msra.mxu1 %v1000_v9  ;;  %1058 = vmatpush.bf16.msra.mxu3 %v1000_v9 }
 0x131   : > { %631 = vmatpush.bf16.msra.mxu1 %v999_v10  ;;  %1059 = vmatpush.bf16.msra.mxu3 %v999_v10 }
 0x135   : > { %632 = vmatpush.bf16.msra.mxu1 %v998_v11  ;;  %1060 = vmatpush.bf16.msra.mxu3 %v998_v11 }
 0x139   : > { %633 = vmatpush.bf16.msra.mxu1 %v997_v12  ;;  %1061 = vmatpush.bf16.msra.mxu3 %v997_v12 }
 0x13d   : > { %634 = vmatpush.bf16.msra.mxu1 %v996_v13  ;;  %1062 = vmatpush.bf16.msra.mxu3 %v996_v13 }
 0x141   : > { %635 = vmatpush.bf16.msra.mxu1 %v995_v14  ;;  %1063 = vmatpush.bf16.msra.mxu3 %v995_v14 }
 0x145   : > { %636 = vmatpush.bf16.msra.mxu1 %v994_v15  ;;  %1064 = vmatpush.bf16.msra.mxu3 %v994_v15 }
 0x148   : > { %637 = vmatmul.bf16.vlgmr.msra.gmra.mxu1 %v986_v16  ;;  %657 = vmatmul.bf16.vlgmr.msra.gmra.mxu3 %v990_v17 }
 0x158   : > { %642 = vmatmul.bf16.gmra.mxu1 %v987_v18  ;;  %662 = vmatmul.bf16.gmra.mxu3 %v991_v19 }
 0x168   : > { %647 = vmatmul.bf16.gmra.mxu1 %v988_v20  ;;  %667 = vmatmul.bf16.gmra.mxu3 %v992_v21 }
 0x178   : > { %652 = vmatmul.bf16.gmra.mxu1 %v989_v22  ;;  %672 = vmatmul.bf16.gmra.mxu3 %v993_v23 }
 0x1c5   : > { %v638_v25 = vpop.f32.mrf.mxu1 }
 0x1c6   : > { %v639_v26 = vadd.f32 %v1522_v24, %v638_v25 }
 0x1c8   : > { %v678_v27 = vmax.f32 %v639_v26, 0.0 }
 0x1ca   : > { %694 = vst [vmem:[%s1507_s5] sm:$0xff] %v678_v27 }
 0x1cb   : > { %712 = vst [vmem:[#allocation2 + $0x30] sm:$0xff] %v678_v27  ;;  %v658_v28 = vpop.f32.mrf.mxu3 }
 0x1cc   : > { %v659_v29 = vadd.f32 %v1522_v24, %v658_v28 }
 0x1cd   : > { %v640_v30 = vpop.f32.mrf.mxu1 }
 0x1ce   : > { %v686_v31 = vmax.f32 %v659_v29, 0.0  ;;  %v641_v32 = vadd.f32 %v1522_v24, %v640_v30 }
 0x1d0   : > { %702 = vst [vmem:[%s1507_s5 + $0x40] sm:$0xff] %v686_v31  ;;  %v679_v33 = vmax.f32 %v641_v32, 0.0 }
 0x1d1   : > { %720 = vst [vmem:[#allocation2 + $0x40] sm:$0xff] %v686_v31 }
 0x1d2   : > { %695 = vst [vmem:[%s1507_s5 + $0x8] sm:$0xff] %v679_v33 }
 0x1d3   : > { %713 = vst [vmem:[#allocation2] sm:$0xff] %v679_v33  ;;  %v660_v34 = vpop.f32.mrf.mxu3 }
 0x1d4   : > { %v661_v35 = vadd.f32 %v1522_v24, %v660_v34 }
 0x1d5   : > { %v643_v36 = vpop.f32.mrf.mxu1 }
 0x1d6   : > { %v687_v37 = vmax.f32 %v661_v35, 0.0  ;;  %v644_v38 = vadd.f32 %v1522_v24, %v643_v36 }
 0x1d8   : > { %703 = vst [vmem:[%s1507_s5 + $0x48] sm:$0xff] %v687_v37  ;;  %v680_v39 = vmax.f32 %v644_v38, 0.0 }
 0x1d9   : > { %721 = vst [vmem:[#allocation2 + $0x20] sm:$0xff] %v687_v37 }
 0x1da   : > { %696 = vst [vmem:[%s1507_s5 + $0x10] sm:$0xff] %v680_v39 }
 0x1db   : > { %714 = vst [vmem:[#allocation2 + $0x58] sm:$0xff] %v680_v39  ;;  %v663_v40 = vpop.f32.mrf.mxu3 }
 0x1dc   : > { %v664_v41 = vadd.f32 %v1522_v24, %v663_v40 }
 0x1dd   : > { %v645_v42 = vpop.f32.mrf.mxu1 }
 0x1de   : > { %v688_v43 = vmax.f32 %v664_v41, 0.0  ;;  %v646_v44 = vadd.f32 %v1522_v24, %v645_v42 }
 0x1e0   : > { %704 = vst [vmem:[%s1507_s5 + $0x50] sm:$0xff] %v688_v43  ;;  %v681_v45 = vmax.f32 %v646_v44, 0.0 }
 0x1e1   : > { %722 = vst [vmem:[#allocation2 + $0x10] sm:$0xff] %v688_v43 }
 0x1e2   : > { %697 = vst [vmem:[%s1507_s5 + $0x18] sm:$0xff] %v681_v45 }
 0x1e3   : > { %715 = vst [vmem:[#allocation2 + $0x18] sm:$0xff] %v681_v45  ;;  %v665_v46 = vpop.f32.mrf.mxu3 }
 0x1e4   : > { %v666_v47 = vadd.f32 %v1522_v24, %v665_v46 }
 0x1e5   : > { %v648_v48 = vpop.f32.mrf.mxu1 }
 0x1e6   : > { %v689_v49 = vmax.f32 %v666_v47, 0.0  ;;  %v649_v50 = vadd.f32 %v1522_v24, %v648_v48 }
 0x1e8   : > { %705 = vst [vmem:[%s1507_s5 + $0x58] sm:$0xff] %v689_v49  ;;  %v682_v51 = vmax.f32 %v649_v50, 0.0 }
 0x1e9   : > { %723 = vst [vmem:[#allocation2 + $0x38] sm:$0xff] %v689_v49 }
 0x1ea   : > { %698 = vst [vmem:[%s1507_s5 + $0x20] sm:$0xff] %v682_v51 }
 0x1eb   : > { %716 = vst [vmem:[#allocation2 + $0x50] sm:$0xff] %v682_v51  ;;  %v668_v52 = vpop.f32.mrf.mxu3 }
 0x1ec   : > { %v669_v53 = vadd.f32 %v1522_v24, %v668_v52 }
 0x1ed   : > { %v650_v54 = vpop.f32.mrf.mxu1 }
 0x1ee   : > { %v690_v55 = vmax.f32 %v669_v53, 0.0  ;;  %v651_v56 = vadd.f32 %v1522_v24, %v650_v54 }
 0x1f0   : > { %706 = vst [vmem:[%s1507_s5 + $0x60] sm:$0xff] %v690_v55  ;;  %v683_v57 = vmax.f32 %v651_v56, 0.0 }
 0x1f1   : > { %724 = vst [vmem:[#allocation2 + $0x60] sm:$0xff] %v690_v55 }
 0x1f2   : > { %699 = vst [vmem:[%s1507_s5 + $0x28] sm:$0xff] %v683_v57 }
 0x1f3   : > { %717 = vst [vmem:[#allocation2 + $0x68] sm:$0xff] %v683_v57  ;;  %v670_v58 = vpop.f32.mrf.mxu3 }
 0x1f4   : > { %v671_v59 = vadd.f32 %v1522_v24, %v670_v58 }
 0x1f5   : > { %v653_v60 = vpop.f32.mrf.mxu1 }
 0x1f6   : > { %v691_v61 = vmax.f32 %v671_v59, 0.0  ;;  %v654_v62 = vadd.f32 %v1522_v24, %v653_v60 }
 0x1f8   : > { %707 = vst [vmem:[%s1507_s5 + $0x68] sm:$0xff] %v691_v61  ;;  %v684_v63 = vmax.f32 %v654_v62, 0.0 }
 0x1f9   : > { %725 = vst [vmem:[#allocation2 + $0x70] sm:$0xff] %v691_v61 }
 0x1fa   : > { %700 = vst [vmem:[%s1507_s5 + $0x30] sm:$0xff] %v684_v63 }
 0x1fb   : > { %718 = vst [vmem:[#allocation2 + $0x8] sm:$0xff] %v684_v63  ;;  %v673_v0 = vpop.f32.mrf.mxu3 }
 0x1fc   : > { %v674_v1 = vadd.f32 %v1522_v24, %v673_v0 }
 0x1fd   : > { %v655_v2 = vpop.f32.mrf.mxu1 }
 0x1fe   : > { %v692_v3 = vmax.f32 %v674_v1, 0.0  ;;  %v656_v4 = vadd.f32 %v1522_v24, %v655_v2 }
 0x200   : > { %708 = vst [vmem:[%s1507_s5 + $0x70] sm:$0xff] %v692_v3  ;;  %v685_v5 = vmax.f32 %v656_v4, 0.0 }
 0x201   : > { %726 = vst [vmem:[#allocation2 + $0x78] sm:$0xff] %v692_v3 }
 0x202   : > { %701 = vst [vmem:[%s1507_s5 + $0x38] sm:$0xff] %v685_v5 }
 0x203   : > { %719 = vst [vmem:[#allocation2 + $0x48] sm:$0xff] %v685_v5  ;;  %v675_v6 = vpop.f32.mrf.mxu3 }
 0x204   : > { %v676_v7 = vadd.f32 %v1522_v24, %v675_v6 }
 0x206   : > { %v693_v8 = vmax.f32 %v676_v7, 0.0 }
 0x208   : > { %709 = vst [vmem:[%s1507_s5 + $0x78] sm:$0xff] %v693_v8 }
 0x209   : > { %727 = vst [vmem:[#allocation2 + $0x28] sm:$0xff] %v693_v8 }
 0x20a   : > { %1273 = shalt.err (!%p1270_p5)
}
 0x20b   : > { %s1344_s0 = smov 128   ;;  %s1345_s30 = smov 256  }
 0x20c   : > { %s1346_s5 = smov 8  }
 0x20d   : > { %1075 = dma.vmem_to_hbm [thread:$0]  (%p1454_p7), %s744_s27, 2048, %s746_s8, %s729_s18, %s1344_s0, %s1345_s30, %s1346_s5  }
 0x20e PF: > { %s760_s23 = sand.u32 1, %s1316_s15   ;;  %p1089_p9 = pnand %p866_p11, %p1417_p6 }
 0x20f   : > { %s761_s7 = scalar_lea.sflag [#allocation6], %s760_s23 }
 0x210   : > { %p1090_p2 = pneg %p1089_p9 }
 0x212   : > { %1311 = dma.done.wait (%p1090_p2), %s761_s7, 2048  }
 0x213   : > { %1313 = vsyncadd (%p1090_p2), %s761_s7, 4294965248  ;;  %s19_s20 = sadd.s32 1, %s1336_s20   ;;  %s1613_s15 = smov %s1320_s16 }
 0x214   : > { %p16_p1 = scmp.ge.s32.totalorder %s19_s20, 4   ;;  %s1614_s16 = smov %s1324_s17 }
 0x215   : > { %s1615_s17 = smov %s1464_s6  ;;  %s1616_s18 = smov %s1332_s19 }
 0x216   : > { %s1617_s19 = smov %s1619_s14  ;;  %18 = sbr.rel (!%p16_p1) target bundleno = 9 (0x9), region = 101 }
 0x21b   :  { %767 = vsyncpa [#allocation5], 1 }
 0x21c   :  { %769 = vsyncpa [#allocation5 + $0x1], 1 }
 0x21d   :  { %770 = vsyncpa [#allocation8], 1 }
 0x21e   :  { %771 = vsyncpa [#allocation6], 1 }
 0x21f   :  { %773 = vsyncpa [#allocation6 + $0x1], 1 }

</bundles_post_ra>
